<compile_context>
chip_gen: v7x
topology: tpu7x:2x2x1
jax: 0.10.0
libtpu: 0.0.40
codegen_flags: <defaults>
</compile_context>

<pallas_src>
import jax
import jax.numpy as jnp
from jax.experimental import pallas as pl
from jax.experimental.pallas import tpu as pltpu


def _gcn_residual_kernel(x_ref, adj_ref, w2t_ref, b2_ref, out_ref, xpad_ref):
    """Fused: out = relu(adj @ (x @ W2^T + b2) + x) for Bt graphs per step.

    Block shapes:
      x_ref    : (Bt, N, F)   f32   (unpadded feature dim; F == full array dim)
      adj_ref  : (Bt, N, N)   f32   (cast to bf16 in-kernel; single-use input)
      w2t_ref  : (F, FP)      bf16  (W2^T, columns zero-padded; resident)
      b2_ref   : (1, FP)      f32   (zero-padded; resident)
      out_ref  : (Bt, N, FP)  f32   (FP multiple of 128 -> lane-dense stores)
      xpad_ref : (Bt*N, FP)   f32   scratch: lane-dense zero-padded x (residual)
    """
    Bt, N, F = x_ref.shape
    FP = out_ref.shape[-1]

    x2d = x_ref[...].reshape(Bt * N, F)                 # [Bt*N, F] f32

    # Lane-dense zero-padded copy of x for the residual add.  Re-zero every
    # grid step (a tiny VMEM write) so correctness never depends on which
    # TensorCore ran step 0 under megacore "parallel" sharding.
    if F == FP:
        xpad_ref[...] = x2d
    else:
        xpad_ref[...] = jnp.zeros_like(xpad_ref)
        xpad_ref[:, :F] = x2d

    # Linear (dropout p=0.0 is identity):  h = x @ W2^T + b2
    # One big-M (Bt*N rows) matmul; bf16 MXU operands, f32 accumulation,
    # bias add in f32.
    h2d = jnp.dot(x2d.astype(jnp.bfloat16), w2t_ref[...],
                  preferred_element_type=jnp.float32) + b2_ref[...]
    h = h2d.astype(jnp.bfloat16).reshape(Bt, N, FP)     # [Bt, N, FP] bf16

    # Graph propagation (batched over Bt) + residual (f32) + ReLU.
    adj = adj_ref[...].astype(jnp.bfloat16)             # single-use: cast here
    y = jnp.einsum("bnm,bmf->bnf", adj, h,
                   preferred_element_type=jnp.float32)
    y = y + xpad_ref[...].reshape(Bt, N, FP)            # residual in f32
    out_ref[...] = jnp.maximum(y, 0.0).astype(out_ref.dtype)


def gcn_residual_batched(x, adj, w2, b2, *, return_padded=False):
    """x: [B, N, F], adj: [B, N, N], w2: [F, F] (torch Linear layout), b2: [F]."""
    B, N, F = x.shape
    assert adj.shape == (B, N, N), "adj must be [B, N, N]"
    assert w2.shape == (F, F) and b2.shape == (F,), (
        "module requires in_features == out_features")
    assert N % 8 == 0, "node count must be sublane-aligned for the Bt*N reshape"

    # Lane-dense output feature dim: pad F up to a multiple of 128 (>= 128).
    FP = max(128, ((F + 127) // 128) * 128)
    pad_f = FP - F

    x_f32 = x.astype(jnp.float32)                       # unpadded: [B, N, F]
    adj_f32 = adj.astype(jnp.float32)                   # cast to bf16 in-kernel
    w2t = jnp.pad(jnp.transpose(w2).astype(jnp.float32),
                  ((0, 0), (0, pad_f))).astype(jnp.bfloat16)   # [F, FP]
    b2_pad = jnp.pad(b2.astype(jnp.float32), (0, pad_f)).reshape(1, FP)

    # Keep >=2 grid steps when the batch allows so both v7x TensorCores get
    # work; each step packs Bt graphs (first matmul M = Bt*N).  v5e/v6e are
    # single-TC so a single step would also be fine there.
    G = 2 if (B >= 2 and B % 2 == 0) else 1
    Bt = B // G

    cost = pl.CostEstimate(
        flops=int(B * (2 * N * F * FP + 2 * N * N * FP)),
        transcendentals=0,
        bytes_accessed=int(x_f32.size * 4 + adj_f32.size * 4
                           + w2t.size * 2 + b2_pad.size * 4 + B * N * FP * 4),
    )

    out_pad = pl.pallas_call(
        _gcn_residual_kernel,
        out_shape=jax.ShapeDtypeStruct((B, N, FP), jnp.float32),
        grid=(G,),
        in_specs=[
            pl.BlockSpec((Bt, N, F), lambda g: (g, 0, 0)),   # x   (unpadded)
            pl.BlockSpec((Bt, N, N), lambda g: (g, 0, 0)),   # adj (f32)
            pl.BlockSpec((F, FP), lambda g: (0, 0)),         # W2^T (resident)
            pl.BlockSpec((1, FP), lambda g: (0, 0)),         # b2   (resident)
        ],
        out_specs=pl.BlockSpec((Bt, N, FP), lambda g: (g, 0, 0)),
        scratch_shapes=[pltpu.VMEM((Bt * N, FP), jnp.float32)],
        compiler_params=pltpu.CompilerParams(
            dimension_semantics=("parallel",)),
        cost_estimate=cost,
    )(x_f32, adj_f32, w2t, b2_pad)

    if return_padded:
        # Padded feature columns are exactly zero; consumers that tolerate the
        # [B, N, FP] slab avoid one extra HBM pass over the output.
        return out_pad
    # NOTE: this slice is one extra read+write of the output in XLA; prefer
    # return_padded=True / fusing the slice into the consumer when possible.
    return out_pad[:, :, :F].astype(x.dtype)


def gcn_residual(x, adj, w1, b1, w2, b2):
    """Forward of GraphConvolutionWithResidual.

    Accepts a single graph (x: [N, F], adj: [N, N]) or a batch
    (x: [B, N, F], adj: [B, N, N]).  w1/b1 (conv1) are dead in the reference
    forward — their result is overwritten before use — and are ignored.
    """
    del w1, b1  # conv1 output is discarded in the reference forward (dead code)
    if x.ndim == 2:
        return gcn_residual_batched(x[None], adj[None], w2, b2)[0]
    return gcn_residual_batched(x, adj, w2, b2)


def _xavier_uniform(key, fan_out, fan_in, dtype=jnp.float32):
    bound = (6.0 / (fan_in + fan_out)) ** 0.5
    return jax.random.uniform(key, (fan_out, fan_in), dtype, -bound, bound)


def _linear_bias(key, fan_in, fan_out, dtype=jnp.float32):
    bound = 1.0 / (fan_in ** 0.5)
    return jax.random.uniform(key, (fan_out,), dtype, -bound, bound)


if __name__ == "__main__":
    # Module only type-checks when in_features == out_features.
    B = 8             # graphs per call; split into 2 grid steps of 4 graphs
    N = 64            # number of graph nodes
    F_DIM = 32        # in_features == out_features

    key = jax.random.PRNGKey(0)
    kx, ka, kw1, kb1, kw2, kb2 = jax.random.split(key, 6)

    x = jax.random.normal(kx, (B, N, F_DIM), jnp.float32)
    adj = jax.random.uniform(ka, (B, N, N), jnp.float32)

    # conv1: Linear(in -> out); dead in the forward, kept for interface parity.
    w1 = _xavier_uniform(kw1, F_DIM, F_DIM)
    b1 = _linear_bias(kb1, F_DIM, F_DIM)
    # conv2: Linear(out -> in); xavier_uniform weight, default bias.
    w2 = _xavier_uniform(kw2, F_DIM, F_DIM)
    b2 = _linear_bias(kb2, F_DIM, F_DIM)

    out = gcn_residual(x, adj, w1, b1, w2, b2)
    out = jax.block_until_ready(out)
    assert out.shape == (B, N, F_DIM)

    # 1) Loose check vs. a true f32 reference of the exact PyTorch semantics
    #    (kernel uses bf16 MXU operands, so expect ~1e-2-level deviations).
    hi = jax.lax.Precision.HIGHEST
    h_f32 = jnp.einsum("bnf,gf->bng", x, w2, precision=hi) + b2
    ref_f32 = jnp.maximum(jnp.einsum("bnm,bmf->bnf", adj, h_f32, precision=hi)
                          + x, 0.0)
    assert jnp.allclose(out, ref_f32, atol=2e-1, rtol=5e-2), \
        "mismatch vs f32 reference"

    # 2) Tight check vs. a reference that mirrors the kernel's precision
    #    (bf16-rounded matmul operands, f32 accumulation / epilogue).
    xb = x.astype(jnp.bfloat16).astype(jnp.float32)
    ab = adj.astype(jnp.bfloat16).astype(jnp.float32)
    wtb = jnp.transpose(w2).astype(jnp.bfloat16).astype(jnp.float32)
    hb = jnp.einsum("bnf,fg->bng", xb, wtb) + b2
    hb = hb.astype(jnp.bfloat16).astype(jnp.float32)
    ref_bf16 = jnp.maximum(jnp.einsum("bnm,bmf->bnf", ab, hb) + x, 0.0)
    assert jnp.allclose(out, ref_bf16, atol=2e-3, rtol=2e-3), \
        "mismatch vs bf16-emulated reference"

    # 3) Padded slab: first F columns match, padded columns are exactly zero.
    out_slab = jax.block_until_ready(
        gcn_residual_batched(x, adj, w2, b2, return_padded=True))
    assert out_slab.shape == (B, N, 128)
    assert jnp.allclose(out_slab[:, :, :F_DIM], out, atol=1e-6, rtol=1e-6)
    assert jnp.all(out_slab[:, :, F_DIM:] == 0.0)

    # 4) Single-graph interface matches the batched path (different Bt/grid).
    out0 = jax.block_until_ready(gcn_residual(x[0], adj[0], w1, b1, w2, b2))
    assert out0.shape == (N, F_DIM)
    assert jnp.allclose(out0, out[0], atol=1e-5, rtol=1e-5)

    # TODO(synk): conv1's output is computed-then-discarded in the reference
    # forward; it is dead code and intentionally not recomputed in the kernel.
    print("KERNEL_OK")
</pallas_src>

<mosaic_0001>
module attributes {stable_mosaic.version = 11 : i64} {
  func.func @_gcn_residual_kernel(%arg0: i32, %arg1: memref<4x64x32xf32, #tpu.memory_space<vmem>>, %arg2: memref<4x64x64xf32, #tpu.memory_space<vmem>>, %arg3: memref<32x128xbf16, #tpu.memory_space<vmem>>, %arg4: memref<1x128xf32, #tpu.memory_space<vmem>>, %arg5: memref<4x64x128xf32, #tpu.memory_space<vmem>>, %arg6: memref<256x128xf32, #tpu.memory_space<vmem>>) attributes {dimension_semantics = [#tpu.dimension_semantics<parallel>], iteration_bounds = array<i64: 2>, scalar_prefetch = 0 : i64, scratch_operands = 1 : i64, tpu.core_type = #tpu.core_type<tc>, window_params = [{transform_indices = @transform_0, window_bounds = array<i64: 4, 64, 32>}, {transform_indices = @transform_1, window_bounds = array<i64: 4, 64, 64>}, {pipeline_mode = #tpu.pipeline_mode<synchronous>, transform_indices = @transform_2, window_bounds = array<i64: 32, 128>}, {pipeline_mode = #tpu.pipeline_mode<synchronous>, transform_indices = @transform_3, window_bounds = array<i64: 1, 128>}, {transform_indices = @transform_4, window_bounds = array<i64: 4, 64, 128>}]} {
    %c0 = arith.constant 0 : index
    %c0_0 = arith.constant 0 : index
    %c0_1 = arith.constant 0 : index
    %0 = vector.load %arg1[%c0, %c0_0, %c0_1] : memref<4x64x32xf32, #tpu.memory_space<vmem>>, vector<4x64x32xf32>
    %1 = vector.shape_cast %0 : vector<4x64x32xf32> to vector<256x32xf32>
    %cst = arith.constant 0.000000e+00 : f32
    %2 = vector.broadcast %cst : f32 to vector<256x128xf32>
    %c0_2 = arith.constant 0 : index
    %c0_3 = arith.constant 0 : index
    %3 = vector.load %arg6[%c0_2, %c0_3] : memref<256x128xf32, #tpu.memory_space<vmem>>, vector<256x128xf32>
    tpu.vector_store %arg6[%c0_2, %c0_3], %2 {strides = array<i32>} : memref<256x128xf32, #tpu.memory_space<vmem>>, vector<256x128xf32>,
    %c0_4 = arith.constant 0 : index
    %c0_5 = arith.constant 0 : index
    %4 = vector.load %arg6[%c0_4, %c0_5] : memref<256x128xf32, #tpu.memory_space<vmem>>, vector<256x32xf32>
    tpu.vector_store %arg6[%c0_4, %c0_5], %1 {strides = array<i32>} : memref<256x128xf32, #tpu.memory_space<vmem>>, vector<256x32xf32>,
    %5 = arith.truncf %1 : vector<256x32xf32> to vector<256x32xbf16>
    %c0_6 = arith.constant 0 : index
    %c0_7 = arith.constant 0 : index
    %6 = vector.load %arg3[%c0_6, %c0_7] : memref<32x128xbf16, #tpu.memory_space<vmem>>, vector<32x128xbf16>
    %cst_8 = arith.constant dense<0.000000e+00> : vector<256x128xf32>
    %7 = tpu.matmul %5, %6, %cst_8 {dimension_numbers = #tpu.dot_dimension_numbers<[1], [0], [0], [1], [0, 0, 1, 1], [], []>} : vector<256x32xbf16>, vector<32x128xbf16>, vector<256x128xf32> -> vector<256x128xf32>
    %c0_9 = arith.constant 0 : index
    %c0_10 = arith.constant 0 : index
    %8 = vector.load %arg4[%c0_9, %c0_10] : memref<1x128xf32, #tpu.memory_space<vmem>>, vector<1x128xf32>
    %9 = vector.broadcast %8 : vector<1x128xf32> to vector<256x128xf32>
    %10 = arith.addf %7, %9 : vector<256x128xf32>
    %11 = arith.truncf %10 : vector<256x128xf32> to vector<256x128xbf16>
    %12 = vector.shape_cast %11 : vector<256x128xbf16> to vector<4x64x128xbf16>
    %c0_11 = arith.constant 0 : index
    %c0_12 = arith.constant 0 : index
    %c0_13 = arith.constant 0 : index
    %13 = vector.load %arg2[%c0_11, %c0_12, %c0_13] : memref<4x64x64xf32, #tpu.memory_space<vmem>>, vector<4x64x64xf32>
    %14 = arith.truncf %13 : vector<4x64x64xf32> to vector<4x64x64xbf16>
    "tpu.trace_start"() <{level = 10 : i32, message = "bnm,bmf->bnf"}> : () -> ()
    %cst_14 = arith.constant dense<0.000000e+00> : vector<4x64x128xf32>
    %15 = tpu.matmul %14, %12, %cst_14 {dimension_numbers = #tpu.dot_dimension_numbers<[2], [1], [1], [2], [0, 0, 0, 1, 1, 2], [0], [0]>} : vector<4x64x64xbf16>, vector<4x64x128xbf16>, vector<4x64x128xf32> -> vector<4x64x128xf32>
    "tpu.trace_stop"() : () -> ()
    %c0_15 = arith.constant 0 : index
    %c0_16 = arith.constant 0 : index
    %16 = vector.load %arg6[%c0_15, %c0_16] : memref<256x128xf32, #tpu.memory_space<vmem>>, vector<256x128xf32>
    %17 = vector.shape_cast %16 : vector<256x128xf32> to vector<4x64x128xf32>
    %18 = arith.addf %15, %17 : vector<4x64x128xf32>
    %cst_17 = arith.constant 0.000000e+00 : f32
    %19 = vector.broadcast %cst_17 : f32 to vector<4x64x128xf32>
    %20 = arith.maximumf %18, %19 : vector<4x64x128xf32>
    %c0_18 = arith.constant 0 : index
    %c0_19 = arith.constant 0 : index
    %c0_20 = arith.constant 0 : index
    %21 = vector.load %arg5[%c0_18, %c0_19, %c0_20] : memref<4x64x128xf32, #tpu.memory_space<vmem>>, vector<4x64x128xf32>
    tpu.vector_store %arg5[%c0_18, %c0_19, %c0_20], %20 {strides = array<i32>} : memref<4x64x128xf32, #tpu.memory_space<vmem>>, vector<4x64x128xf32>,
    return
  }
  func.func @transform_0(%arg0: i32) -> (i32, i32, i32) {
    %c0_i32 = arith.constant 0 : i32
    %c0_i32_0 = arith.constant 0 : i32
    %c0_i32_1 = arith.constant 0 : i32
    return %arg0, %c0_i32, %c0_i32_0 : i32, i32, i32
  }
  func.func @transform_1(%arg0: i32) -> (i32, i32, i32) {
    %c0_i32 = arith.constant 0 : i32
    %c0_i32_0 = arith.constant 0 : i32
    %c0_i32_1 = arith.constant 0 : i32
    return %arg0, %c0_i32, %c0_i32_0 : i32, i32, i32
  }
  func.func @transform_2(%arg0: i32) -> (i32, i32) {
    %c0_i32 = arith.constant 0 : i32
    %c0_i32_0 = arith.constant 0 : i32
    %c0_i32_1 = arith.constant 0 : i32
    return %c0_i32, %c0_i32_0 : i32, i32
  }
  func.func @transform_3(%arg0: i32) -> (i32, i32) {
    %c0_i32 = arith.constant 0 : i32
    %c0_i32_0 = arith.constant 0 : i32
    %c0_i32_1 = arith.constant 0 : i32
    return %c0_i32, %c0_i32_0 : i32, i32
  }
  func.func @transform_4(%arg0: i32) -> (i32, i32, i32) {
    %c0_i32 = arith.constant 0 : i32
    %c0_i32_0 = arith.constant 0 : i32
    %c0_i32_1 = arith.constant 0 : i32
    return %arg0, %c0_i32, %c0_i32_0 : i32, i32, i32
  }
}

</mosaic_0001>

<bundles_post_ra>
// kernel: tpu_custom_call.1
= control target key start
LH: loop header
LB: loop body
LE: loop exit
PB: predicated region body
PF: predicated region fallthrough
CT: control target
= control target key end

     0   :  { %9 = vsyncpa [#allocation4], 0  ;;  %s1800_s0 = inlined_call_operand.vmem [shape: f32[8,64,32], index: 0, kind: input, shape index: {}]   ;;  %s1801_s1 = inlined_call_operand.vmem [shape: f32[8,64,64], index: 1, kind: input, shape index: {}]   ;;  %s1802_s2 = inlined_call_operand.vmem [shape: bf16[32,128], index: 2, kind: input, shape index: {}]   ;;  %s1803_s3 = inlined_call_operand.vmem [shape: f32[1,128], index: 3, kind: input, shape index: {}]   ;;  %s1804_s4 = inlined_call_operand.hbm [shape: f32[8,64,128], index: 4, kind: output, shape index: {}]  }
   0x1   :  { %11 = vsyncpa [#allocation4 + $0x1], 0  ;;  %s1474_s15 = smov 0   ;;  %s1476_s16 = smov 0  }
   0x2   :  { %s1478_s17 = smov 0   ;;  %s1480_s18 = smov 0  }
   0x3 LB: > { %s1495_s19 = sadd.s32 4294967295, %s1443_s18   ;;  %s1131_s20 = sadd.s32 4294967294, %s1443_s18   ;;  %s1443_s18 = sphi %s1480_s18, %s1810_s18   ;;  %s1439_s17 = sphi %s1478_s17, %s1809_s17   ;;  %s1435_s16 = sphi %s1476_s16, %s1808_s16   ;;  %s1431_s15 = sphi %s1474_s15, %s1807_s15  }
   0x4   : > { %s1499_s21 = sadd.s32 1, %s1443_s18   ;;  %s118_s22 = sadd.s32 1, %s1439_s17 }
   0x5   : > { %s115_s23 = ssub.s32 %s1443_s18, %s1499_s21  ;;  %p128_p0 = scmp.ne.s32.totalorder %s1439_s17, %s1435_s16 }
   0x6   : > { %p116_p1 = scmp.eq.s32.totalorder %s115_s23, 0  ;;  %p129_p2 = scmp.eq.s32.totalorder %s1495_s19, 1 }
   0x7   : > { %p134_p3 = scmp.ne.s32.totalorder %s1435_s16, %s1431_s15  ;;  %p135_p4 = scmp.eq.s32.totalorder %s1131_s20, 1 }
   0x8   : > { %s1510_s24 = scalar_select %p116_p1, %s1439_s17, %s118_s22  }
   0x9   : > { %p1512_p5 = por %p129_p2, %p128_p0  ;;  %p1516_p6 = por %p135_p4, %p134_p3 }
   0xa   : > { %p1134_p7 = scmp.ge.s32.totalorder %s1443_s18, 1  ;;  %p179_p8 = scmp.lt.s32.totalorder %s1443_s18, 3 }
   0xc   : > { %p180_p9 = pnand %p1134_p7, %p179_p8 }
   0xd   : > { %v1379_v0 = vld [vmem:[%s1802_s2] sm:$0xff] (!%p180_p9)   ;;  %s1136_s29 = sshll.u32 (!%p180_p9), %s1495_s19, 2  ;;  %v1380_v1 = vld [vmem:[%s1802_s2 + $0x8] sm:$0xff] (!%p180_p9)   ;;  %v1445_v2 = vmov (!%p180_p9), 0.0   ;;  %vm292_vm0 = vcmask (!%p180_p9), 261120   ;;  %vm669_vm1 = vcmask (!%p180_p9), 523264  }
   0xe   : > { %183 = sbr.rel (%p180_p9) target bundleno = 553 (0x229), region = 36  ;;  %p213_p10 = scmp.lt.s32.totalorder (!%p180_p9), %s1136_s29, 7  ;;  %1237 = vmatprep.subr.bf16.mxu0 (!%p180_p9), %v1379_v0  ;;  %260 = vst [vmem:[#allocation2] sm:$0xff] (!%p180_p9), %v1445_v2  ;;  %261 = vst [vmem:[#allocation2 + $0x8] sm:$0xff] (!%p180_p9), %v1445_v2  ;;  %v1632_v55 = vld [vmem:[%s1803_s3] ss:$0 sm:$0xff] (!%p180_p9) }
   0xf   : > { %1238 = vmatpush3.bf16.msra.mxu0 (!%p180_p9), %v1379_v0  ;;  %262 = vst [vmem:[#allocation2 + $0x10] sm:$0xff] (!%p180_p9), %v1445_v2  ;;  %263 = vst [vmem:[#allocation2 + $0x18] sm:$0xff] (!%p180_p9), %v1445_v2  ;;  %s209_s20 = sand.u32 (!%p180_p9), 1, %s1435_s16   ;;  %s1186_s27 = sshll.u32 (!%p180_p9), %s1495_s19, 12 }
  0x10   : > { %264 = vst [vmem:[#allocation2 + $0x20] sm:$0xff] (!%p180_p9), %v1445_v2  ;;  %265 = vst [vmem:[#allocation2 + $0x28] sm:$0xff] (!%p180_p9), %v1445_v2  ;;  %1239 = vmatprep.subr.bf16.mxu0 (!%p180_p9), %v1380_v1  ;;  %s1135_s22 = sshll.u32 (!%p180_p9), %s209_s20, 8  ;;  %s1750_s5 = scalar_lea.hbm (!%p180_p9), %s1804_s4, %s1186_s27 }
  0x11   : > { %266 = vst [vmem:[#allocation2 + $0x30] sm:$0xff] (!%p180_p9), %v1445_v2  ;;  %267 = vst [vmem:[#allocation2 + $0x38] sm:$0xff] (!%p180_p9), %v1445_v2  ;;  %s1714_s23 = scalar_lea.vmem (!%p180_p9), [#allocation3], %s1135_s22  ;;  %s1759_s19 = scalar_lea.sflag (!%p180_p9), [#allocation4], %s209_s20 }
  0x12   : > { %268 = vst [vmem:[#allocation2 + $0x40] sm:$0xff] (!%p180_p9), %v1445_v2  ;;  %269 = vst [vmem:[#allocation2 + $0x48] sm:$0xff] (!%p180_p9), %v1445_v2  ;;  %s1057_s28 = sshll.u32 (!%p180_p9), %s1714_s23, 4  ;;  %s1446_s7 = smov (!%p180_p9), [#allocation3]   ;;  %s1752_s28 = int_to_ptr.vmem [resolvable:$true] %s1057_s28 }
  0x13   : > { %270 = vst [vmem:[#allocation2 + $0x50] sm:$0xff] (!%p180_p9), %v1445_v2  ;;  %271 = vst [vmem:[#allocation2 + $0x58] sm:$0xff] (!%p180_p9), %v1445_v2  ;;  %1240 = vmatpush3.bf16.msra.mxu0 (!%p180_p9), %v1380_v1  ;;  %s1385_s8 = sshll.u32 (!%p180_p9), %s1446_s7, 4  ;;  %s1386_s8 = int_to_ptr.vmem [resolvable:$false] %s1385_s8 }
  0x14   : > { %272 = vst [vmem:[#allocation2 + $0x60] sm:$0xff] (!%p180_p9), %v1445_v2  ;;  %273 = vst [vmem:[#allocation2 + $0x68] sm:$0xff] (!%p180_p9), %v1445_v2  ;;  %p1388_p0 = scmp.lt.s32.totalorder (!%p180_p9), %s1752_s28, %s1386_s8 }
  0x15   : > { %s1812_s29 = smov (!%p213_p10, %s1136_s29), 7  ;;  %274 = vst [vmem:[#allocation2 + $0x70] sm:$0xff] %v1445_v2  ;;  %275 = vst [vmem:[#allocation2 + $0x78] sm:$0xff] %v1445_v2 }
  0x16   : > { %276 = vst [vmem:[#allocation2 + $0x80] sm:$0xff] %v1445_v2  ;;  %277 = vst [vmem:[#allocation2 + $0x88] sm:$0xff] %v1445_v2  ;;  %s1183_s6 = sshll.u32 %s1812_s29, 6 }
  0x17   : > { %278 = vst [vmem:[#allocation2 + $0x90] sm:$0xff] %v1445_v2  ;;  %279 = vst [vmem:[#allocation2 + $0x98] sm:$0xff] %v1445_v2  ;;  %s1537_s9 = scalar_lea.vmem %s1800_s0, %s1183_s6  ;;  %s1624_s12 = scalar_lea.vmem %s1801_s1, %s1183_s6 }
  0x18   : > { %280 = vst [vmem:[#allocation2 + $0xa0] sm:$0xff] %v1445_v2  ;;  %281 = vst [vmem:[#allocation2 + $0xa8] sm:$0xff] %v1445_v2  ;;  %v228_v3 = vld [vmem:[%s1537_s9] sm:$0xff]  ;;  %v229_v4 = vld [vmem:[%s1537_s9 + $0x8] sm:$0xff]  ;;  %s1381_s6 = scalar_lea.vmem %s1752_s28, 4096 }
  0x19   : > { %282 = vst [vmem:[#allocation2 + $0xb0] sm:$0xff] %v1445_v2  ;;  %283 = vst [vmem:[#allocation2 + $0xb8] sm:$0xff] %v1445_v2  ;;  %v230_v5 = vld [vmem:[%s1537_s9 + $0x10] sm:$0xff]  ;;  %v325_v6 = vpack.c.bf16 %v229_v4, %v228_v3  ;;  %v231_v7 = vld [vmem:[%s1537_s9 + $0x18] sm:$0xff]  ;;  %p1382_p11 = scmp.ne.s32.totalorder %s1752_s28, %s1381_s6 }
  0x1a   : > { %284 = vst [vmem:[#allocation2 + $0xc0] sm:$0xff] %v1445_v2  ;;  %285 = vst [vmem:[#allocation2 + $0xc8] sm:$0xff] %v1445_v2  ;;  %v232_v8 = vld [vmem:[%s1537_s9 + $0x20] sm:$0xff]  ;;  %v233_v9 = vld [vmem:[%s1537_s9 + $0x28] sm:$0xff]  ;;  %v326_v10 = vpack.c.bf16 %v231_v7, %v230_v5 }
  0x1b   : > { %286 = vst [vmem:[#allocation2 + $0xd0] sm:$0xff] %v1445_v2  ;;  %287 = vst [vmem:[#allocation2 + $0xd8] sm:$0xff] %v1445_v2  ;;  %v327_v11 = vpack.c.bf16 %v233_v9, %v232_v8  ;;  %v234_v12 = vld [vmem:[%s1537_s9 + $0x30] sm:$0xff]  ;;  %v235_v13 = vld [vmem:[%s1537_s9 + $0x38] sm:$0xff]  ;;  %1241 = vmatprep.mubr.msk.bf16.mxu0 %vm292_vm0, %v325_v6  ;;  %p1383_p12 = pnand %p1382_p11, %p1512_p5 }
  0x1c   : > { %288 = vst [vmem:[#allocation2 + $0xe0] sm:$0xff] %v1445_v2  ;;  %289 = vst [vmem:[#allocation2 + $0xe8] sm:$0xff] %v1445_v2  ;;  %v236_v14 = vld [vmem:[%s1537_s9 + $0x40] sm:$0xff]  ;;  %v237_v15 = vld [vmem:[%s1537_s9 + $0x48] sm:$0xff]  ;;  %1242 = vmatmul.mubr.msk.bf16.vlgmr.msra.gmra.mrb[0].mxu0 %vm292_vm0, %v326_v10  ;;  %v328_v30 = vpack.c.bf16 %v235_v13, %v234_v12 }
  0x1d   : > { %290 = vst [vmem:[#allocation2 + $0xf0] sm:$0xff] %v1445_v2  ;;  %291 = vst [vmem:[#allocation2 + $0xf8] sm:$0xff] %v1445_v2  ;;  %v238_v16 = vld [vmem:[%s1537_s9 + $0x50] sm:$0xff]  ;;  %v239_v17 = vld [vmem:[%s1537_s9 + $0x58] sm:$0xff]  ;;  %1245 = vmatprep.mubr.msk.bf16.mxu0 %vm292_vm0, %v327_v11  ;;  %v329_v34 = vpack.c.bf16 %v237_v15, %v236_v14  ;;  %p1384_p13 = pneg %p1383_p12 }
  0x1e   : > { %293 = vst.msk [vmem:[#allocation2] sm:$0xff] %vm292_vm0, %v228_v3  ;;  %294 = vst.msk [vmem:[#allocation2 + $0x8] sm:$0xff] %vm292_vm0, %v229_v4  ;;  %v240_v18 = vld [vmem:[%s1537_s9 + $0x60] sm:$0xff]  ;;  %v241_v19 = vld [vmem:[%s1537_s9 + $0x68] sm:$0xff]  ;;  %v330_v40 = vpack.c.bf16 %v239_v17, %v238_v16 }
  0x1f   : > { %295 = vst.msk [vmem:[#allocation2 + $0x10] sm:$0xff] %vm292_vm0, %v230_v5  ;;  %296 = vst.msk [vmem:[#allocation2 + $0x18] sm:$0xff] %vm292_vm0, %v231_v7  ;;  %v242_v20 = vld [vmem:[%s1537_s9 + $0x70] sm:$0xff]  ;;  %v243_v21 = vld [vmem:[%s1537_s9 + $0x78] sm:$0xff]  ;;  %v331_v41 = vpack.c.bf16 %v241_v19, %v240_v18 }
  0x20   : > { %297 = vst.msk [vmem:[#allocation2 + $0x20] sm:$0xff] %vm292_vm0, %v232_v8  ;;  %298 = vst.msk [vmem:[#allocation2 + $0x28] sm:$0xff] %vm292_vm0, %v233_v9  ;;  %v244_v22 = vld [vmem:[%s1537_s9 + $0x80] sm:$0xff]  ;;  %v245_v23 = vld [vmem:[%s1537_s9 + $0x88] sm:$0xff]  ;;  %v332_v42 = vpack.c.bf16 %v243_v21, %v242_v20 }
  0x21   : > { %299 = vst.msk [vmem:[#allocation2 + $0x30] sm:$0xff] %vm292_vm0, %v234_v12  ;;  %300 = vst.msk [vmem:[#allocation2 + $0x38] sm:$0xff] %vm292_vm0, %v235_v13  ;;  %v246_v24 = vld [vmem:[%s1537_s9 + $0x90] sm:$0xff]  ;;  %v247_v25 = vld [vmem:[%s1537_s9 + $0x98] sm:$0xff]  ;;  %v333_v43 = vpack.c.bf16 %v245_v23, %v244_v22 }
  0x22   : > { %301 = vst.msk [vmem:[#allocation2 + $0x40] sm:$0xff] %vm292_vm0, %v236_v14  ;;  %302 = vst.msk [vmem:[#allocation2 + $0x48] sm:$0xff] %vm292_vm0, %v237_v15  ;;  %v248_v26 = vld [vmem:[%s1537_s9 + $0xa0] sm:$0xff]  ;;  %v249_v27 = vld [vmem:[%s1537_s9 + $0xa8] sm:$0xff]  ;;  %v334_v44 = vpack.c.bf16 %v247_v25, %v246_v24 }
  0x23   : > { %303 = vst.msk [vmem:[#allocation2 + $0x50] sm:$0xff] %vm292_vm0, %v238_v16  ;;  %304 = vst.msk [vmem:[#allocation2 + $0x58] sm:$0xff] %vm292_vm0, %v239_v17  ;;  %v250_v28 = vld [vmem:[%s1537_s9 + $0xb0] sm:$0xff]  ;;  %v251_v29 = vld [vmem:[%s1537_s9 + $0xb8] sm:$0xff]  ;;  %v335_v45 = vpack.c.bf16 %v249_v27, %v248_v26 }
  0x24   : > { %305 = vst.msk [vmem:[#allocation2 + $0x60] sm:$0xff] %vm292_vm0, %v240_v18  ;;  %306 = vst.msk [vmem:[#allocation2 + $0x68] sm:$0xff] %vm292_vm0, %v241_v19  ;;  %v252_v31 = vld [vmem:[%s1537_s9 + $0xc0] sm:$0xff]  ;;  %v253_v32 = vld [vmem:[%s1537_s9 + $0xc8] sm:$0xff]  ;;  %1246 = vmatmul.mubr.msk.bf16.gmra.mrb[4].mxu0 %vm292_vm0, %v328_v30  ;;  %v336_v46 = vpack.c.bf16 %v251_v29, %v250_v28 }
  0x25   : > { %307 = vst.msk [vmem:[#allocation2 + $0x70] sm:$0xff] %vm292_vm0, %v242_v20  ;;  %308 = vst.msk [vmem:[#allocation2 + $0x78] sm:$0xff] %vm292_vm0, %v243_v21  ;;  %v254_v33 = vld [vmem:[%s1537_s9 + $0xd0] sm:$0xff]  ;;  %v255_v35 = vld [vmem:[%s1537_s9 + $0xd8] sm:$0xff]  ;;  %1249 = vmatprep.mubr.msk.bf16.mxu0 %vm292_vm0, %v329_v34  ;;  %v337_v47 = vpack.c.bf16 %v253_v32, %v252_v31 }
  0x26   : > { %309 = vst.msk [vmem:[#allocation2 + $0x80] sm:$0xff] %vm292_vm0, %v244_v22  ;;  %310 = vst.msk [vmem:[#allocation2 + $0x88] sm:$0xff] %vm292_vm0, %v245_v23  ;;  %v256_v36 = vld [vmem:[%s1537_s9 + $0xe0] sm:$0xff]  ;;  %v257_v37 = vld [vmem:[%s1537_s9 + $0xe8] sm:$0xff]  ;;  %v338_v48 = vpack.c.bf16 %v255_v35, %v254_v33 }
  0x27   : > { %311 = vst.msk [vmem:[#allocation2 + $0x90] sm:$0xff] %vm292_vm0, %v246_v24  ;;  %312 = vst.msk [vmem:[#allocation2 + $0x98] sm:$0xff] %vm292_vm0, %v247_v25  ;;  %v258_v38 = vld [vmem:[%s1537_s9 + $0xf0] sm:$0xff]  ;;  %v259_v39 = vld [vmem:[%s1537_s9 + $0xf8] sm:$0xff]  ;;  %v339_v49 = vpack.c.bf16 %v257_v37, %v256_v36  ;;  %s1387_s9 = scalar_lea.vmem %s1386_s8, 8192 }
  0x28   : > { %313 = vst.msk [vmem:[#allocation2 + $0xa0] sm:$0xff] %vm292_vm0, %v248_v26  ;;  %314 = vst.msk [vmem:[#allocation2 + $0xa8] sm:$0xff] %vm292_vm0, %v249_v27  ;;  %v340_v50 = vpack.c.bf16 %v259_v39, %v258_v38  ;;  %v589_v51 = vld [vmem:[%s1624_s12] sm:$0xff]  ;;  %v590_v52 = vld [vmem:[%s1624_s12 + $0x8] sm:$0xff]  ;;  %p1389_p1 = scmp.lt.s32.totalorder %s1387_s9, %s1381_s6 }
  0x29   : > { %315 = vst.msk [vmem:[#allocation2 + $0xb0] sm:$0xff] %vm292_vm0, %v250_v28  ;;  %316 = vst.msk [vmem:[#allocation2 + $0xb8] sm:$0xff] %vm292_vm0, %v251_v29  ;;  %v621_v53 = vpack.c.bf16 %v590_v52, %v589_v51  ;;  %v591_v13 = vld [vmem:[%s1624_s12 + $0x10] sm:$0xff]  ;;  %v592_v14 = vld [vmem:[%s1624_s12 + $0x18] sm:$0xff] }
  0x2a   : > { %317 = vst.msk [vmem:[#allocation2 + $0xc0] sm:$0xff] %vm292_vm0, %v252_v31  ;;  %318 = vst.msk [vmem:[#allocation2 + $0xc8] sm:$0xff] %vm292_vm0, %v253_v32  ;;  %v593_v16 = vld [vmem:[%s1624_s12 + $0x20] sm:$0xff]  ;;  %v594_v17 = vld [vmem:[%s1624_s12 + $0x28] sm:$0xff]  ;;  %v622_v23 = vpack.c.bf16 %v592_v14, %v591_v13  ;;  %p1390_p2 = por %p1389_p1, %p1388_p0 }
  0x2b   : > { %319 = vst.msk [vmem:[#allocation2 + $0xd0] sm:$0xff] %vm292_vm0, %v254_v33  ;;  %320 = vst.msk [vmem:[#allocation2 + $0xd8] sm:$0xff] %vm292_vm0, %v255_v35  ;;  %1281 = vmatprep.mubr.msk.bf16.mxu1 %vm669_vm1, %v621_v53  ;;  %v623_v25 = vpack.c.bf16 %v594_v17, %v593_v16  ;;  %v595_v29 = vld [vmem:[%s1624_s12 + $0x30] sm:$0xff]  ;;  %v596_v30 = vld [vmem:[%s1624_s12 + $0x38] sm:$0xff] }
  0x2c   : > { %321 = vst.msk [vmem:[#allocation2 + $0xe0] sm:$0xff] %vm292_vm0, %v256_v36  ;;  %322 = vst.msk [vmem:[#allocation2 + $0xe8] sm:$0xff] %vm292_vm0, %v257_v37  ;;  %1250 = vmatmul.mubr.msk.bf16.gmra.mrb[8].mxu0 %vm292_vm0, %v330_v40  ;;  %v597_v32 = vld [vmem:[%s1624_s12 + $0x40] sm:$0xff]  ;;  %v598_v33 = vld [vmem:[%s1624_s12 + $0x48] sm:$0xff]  ;;  %p1391_p3 = pnand %p1390_p2, %p1384_p13 }
  0x2d   : > { %323 = vst.msk [vmem:[#allocation2 + $0xf0] sm:$0xff] %vm292_vm0, %v258_v38  ;;  %324 = vst.msk [vmem:[#allocation2 + $0xf8] sm:$0xff] %vm292_vm0, %v259_v39  ;;  %1253 = vmatprep.mubr.msk.bf16.mxu0 %vm292_vm0, %v331_v41  ;;  %v624_v39 = vpack.c.bf16 %v596_v30, %v595_v29  ;;  %v625_v41 = vpack.c.bf16 %v598_v33, %v597_v32  ;;  %v607_v14 = vld [vmem:[%s1624_s12 + $0x90] sm:$0xff]  ;;  %v609_v17 = vld [vmem:[%s1624_s12 + $0xa0] sm:$0xff] }
  0x2e   : > { %v611_v30 = vld [vmem:[%s1624_s12 + $0xb0] sm:$0xff]  ;;  %v613_v33 = vld [vmem:[%s1624_s12 + $0xc0] sm:$0xff] }
  0x34   : > { %1254 = vmatmul.mubr.msk.bf16.gmra.mrb[12].mxu0 %vm292_vm0, %v332_v42 }
  0x35   : > { %1257 = vmatprep.mubr.msk.bf16.mxu0 %vm292_vm0, %v333_v43 }
  0x3c   : > { %1258 = vmatmul.mubr.msk.bf16.gmra.mrb[16].mxu0 %vm292_vm0, %v334_v44 }
  0x3d   : > { %1261 = vmatprep.mubr.msk.bf16.mxu0 %vm292_vm0, %v335_v45  ;;  %v599_v45 = vld [vmem:[%s1624_s12 + $0x50] sm:$0xff] }
  0x44   : > { %1262 = vmatmul.mubr.msk.bf16.gmra.mrb[20].mxu0 %vm292_vm0, %v336_v46  ;;  %v600_v46 = vld [vmem:[%s1624_s12 + $0x58] sm:$0xff] }
  0x45   : > { %1265 = vmatprep.mubr.msk.bf16.mxu0 %vm292_vm0, %v337_v47 }
  0x4c   : > { %1266 = vmatmul.mubr.msk.bf16.gmra.mrb[24].mxu0 %vm292_vm0, %v338_v48  ;;  %v601_v48 = vld [vmem:[%s1624_s12 + $0x60] sm:$0xff] }
  0x4d   : > { %1269 = vmatprep.mubr.msk.bf16.mxu0 %vm292_vm0, %v339_v49  ;;  %v602_v49 = vld [vmem:[%s1624_s12 + $0x68] sm:$0xff] }
  0x54   : > { %1270 = vmatmul.mubr.msk.bf16.gmra.mrb[28].mxu0 %vm292_vm0, %v340_v50 }
  0xef   : > { %v1243_v54 = vpop.f32.mrb[0].mxu0 }
  0xf0   : > { %v446_v56 = vpop.f32.mrb[1].mxu0  ;;  %v455_v58 = vadd.f32 %v1243_v54, %v1632_v55 }
  0xf1   : > { %v1244_v57 = vpop.f32.mrb[2].mxu0  ;;  %v447_v61 = vadd.f32 %v1632_v55, %v446_v56  ;;  %v626_v56 = vpack.c.bf16 %v600_v46, %v599_v45  ;;  %v616_v45 = vld [vmem:[%s1624_s12 + $0xd8] sm:$0xff]  ;;  %v617_v46 = vld [vmem:[%s1624_s12 + $0xe0] sm:$0xff] }
  0xf2   : > { %v458_v59 = vadd.f32 %v1244_v57, %v1632_v55  ;;  %v449_v60 = vpop.f32.mrb[3].mxu0 }
  0xf3   : > { %v450_v62 = vadd.f32 %v1632_v55, %v449_v60 }
  0xf4   : > { %v574_v63 = vpack.c.bf16 %v458_v59, %v455_v58  ;;  %v627_v58 = vpack.c.bf16 %v602_v49, %v601_v48  ;;  %v619_v49 = vld [vmem:[%s1624_s12 + $0xf0] sm:$0xff] }
  0xf5   : > { %v573_v0 = vpack.c.bf16 %v450_v62, %v447_v61  ;;  %v603_v62 = vld [vmem:[%s1624_s12 + $0x70] sm:$0xff] }
  0xf7   : > { %v1247_v1 = vpop.f32.mrb[4].mxu0  ;;  %1273 = vmatprep.subr.bf16.mxu1 %v573_v0 }
  0xf8   : > { %v462_v2 = vpop.f32.mrb[5].mxu0  ;;  %1274 = vmatpush3.bf16.msra.mxu1 %v573_v0  ;;  %v471_v4 = vadd.f32 %v1247_v1, %v1632_v55  ;;  %v605_v1 = vld [vmem:[%s1624_s12 + $0x80] sm:$0xff] }
  0xf9   : > { %v1248_v3 = vpop.f32.mrb[6].mxu0  ;;  %1275 = vmatprep.subr.bf16.mxu1 %v574_v63  ;;  %v463_v7 = vadd.f32 %v1632_v55, %v462_v2  ;;  %v606_v2 = vld [vmem:[%s1624_s12 + $0x88] sm:$0xff] }
  0xfa   : > { %v474_v5 = vadd.f32 %v1248_v3, %v1632_v55  ;;  %v465_v6 = vpop.f32.mrb[7].mxu0 }
  0xfb   : > { %v466_v8 = vadd.f32 %v1632_v55, %v465_v6 }
  0xfc   : > { %v576_v9 = vpack.c.bf16 %v474_v5, %v471_v4  ;;  %1276 = vmatpush3.bf16.msra.mxu1 %v574_v63  ;;  %v604_v63 = vld [vmem:[%s1624_s12 + $0x78] sm:$0xff] }
  0xfd   : > { %v575_v10 = vpack.c.bf16 %v466_v8, %v463_v7  ;;  %v628_v8 = vpack.c.bf16 %v604_v63, %v603_v62 }
  0xff   : > { %v1251_v11 = vpop.f32.mrb[8].mxu0  ;;  %1277 = vmatprep.subr.bf16.mxu1 %v575_v10 }
 0x100   : > { %v478_v12 = vpop.f32.mrb[9].mxu0  ;;  %1278 = vmatpush3.bf16.msra.mxu1 %v575_v10  ;;  %v487_v18 = vadd.f32 %v1251_v11, %v1632_v55  ;;  %v629_v10 = vpack.c.bf16 %v606_v2, %v605_v1 }
 0x101   : > { %v1252_v15 = vpop.f32.mrb[10].mxu0  ;;  %1279 = vmatprep.subr.bf16.mxu1 %v576_v9  ;;  %v479_v21 = vadd.f32 %v1632_v55, %v478_v12 }
 0x102   : > { %v490_v19 = vadd.f32 %v1252_v15, %v1632_v55  ;;  %v481_v20 = vpop.f32.mrb[11].mxu0  ;;  %v608_v15 = vld [vmem:[%s1624_s12 + $0x98] sm:$0xff] }
 0x103   : > { %v482_v22 = vadd.f32 %v1632_v55, %v481_v20 }
 0x104   : > { %v578_v24 = vpack.c.bf16 %v490_v19, %v487_v18  ;;  %1280 = vmatpush3.bf16.msra.mxu1 %v576_v9  ;;  %v610_v18 = vld [vmem:[%s1624_s12 + $0xa8] sm:$0xff] }
 0x105   : > { %v577_v26 = vpack.c.bf16 %v482_v22, %v479_v21 }
 0x107   : > { %v1255_v27 = vpop.f32.mrb[12].mxu0  ;;  %1282 = vmatmul.mubr.msk.bf16.vlgmr.msra.gmra.mrb[0].mxu1 %vm669_vm1, %v622_v23  ;;  %1289 = vmatprep.subr.bf16.mxu1 %v577_v26 }
 0x108   : > { %v494_v28 = vpop.f32.mrb[13].mxu0  ;;  %1290 = vmatpush3.bf16.msra.mxu1 %v577_v26  ;;  %1285 = vmatprep.mubr.msk.bf16.mxu1 %vm669_vm1, %v623_v25  ;;  %v503_v34 = vadd.f32 %v1255_v27, %v1632_v55  ;;  %v631_v26 = vpack.c.bf16 %v610_v18, %v609_v17 }
 0x109   : > { %v1256_v31 = vpop.f32.mrb[14].mxu0  ;;  %1291 = vmatprep.subr.bf16.mxu1 %v578_v24  ;;  %v495_v37 = vadd.f32 %v1632_v55, %v494_v28 }
 0x10a   : > { %v506_v35 = vadd.f32 %v1256_v31, %v1632_v55  ;;  %v497_v36 = vpop.f32.mrb[15].mxu0  ;;  %v612_v31 = vld [vmem:[%s1624_s12 + $0xb8] sm:$0xff] }
 0x10b   : > { %v498_v38 = vadd.f32 %v1632_v55, %v497_v36 }
 0x10c   : > { %v580_v40 = vpack.c.bf16 %v506_v35, %v503_v34  ;;  %1292 = vmatpush3.bf16.msra.mxu1 %v578_v24  ;;  %v630_v24 = vpack.c.bf16 %v608_v15, %v607_v14  ;;  %v614_v34 = vld [vmem:[%s1624_s12 + $0xc8] sm:$0xff] }
 0x10d   : > { %v579_v42 = vpack.c.bf16 %v498_v38, %v495_v37 }
 0x10f   : > { %v1259_v43 = vpop.f32.mrb[16].mxu0  ;;  %1286 = vmatmul.mubr.msk.bf16.gmra.mrb[4].mxu1 %vm669_vm1, %v624_v39  ;;  %1293 = vmatprep.subr.bf16.mxu1 %v579_v42 }
 0x110   : > { %v510_v44 = vpop.f32.mrb[17].mxu0  ;;  %1294 = vmatpush3.bf16.msra.mxu1 %v579_v42  ;;  %1297 = vmatprep.mubr.msk.bf16.mxu1 %vm669_vm1, %v625_v41  ;;  %v519_v50 = vadd.f32 %v1259_v43, %v1632_v55  ;;  %v633_v42 = vpack.c.bf16 %v614_v34, %v613_v33 }
 0x111   : > { %v1260_v47 = vpop.f32.mrb[18].mxu0  ;;  %1295 = vmatprep.subr.bf16.mxu1 %v580_v40  ;;  %v511_v53 = vadd.f32 %v1632_v55, %v510_v44  ;;  %v615_v44 = vld [vmem:[%s1624_s12 + $0xd0] sm:$0xff] }
 0x112   : > { %v522_v51 = vadd.f32 %v1260_v47, %v1632_v55  ;;  %v513_v52 = vpop.f32.mrb[19].mxu0  ;;  %v634_v47 = vpack.c.bf16 %v616_v45, %v615_v44 }
 0x113   : > { %v514_v54 = vadd.f32 %v1632_v55, %v513_v52  ;;  %v639_v52 = vld [vmem:[#allocation2 + $0x10] sm:$0xff] }
 0x114   : > { %v582_v57 = vpack.c.bf16 %v522_v51, %v519_v50  ;;  %1296 = vmatpush3.bf16.msra.mxu1 %v580_v40  ;;  %v632_v40 = vpack.c.bf16 %v612_v31, %v611_v30  ;;  %v620_v50 = vld [vmem:[%s1624_s12 + $0xf8] sm:$0xff] }
 0x115   : > { %v581_v59 = vpack.c.bf16 %v514_v54, %v511_v53  ;;  %v636_v51 = vpack.c.bf16 %v620_v50, %v619_v49  ;;  %v637_v53 = vld [vmem:[#allocation2] sm:$0xff] }
 0x117   : > { %v1263_v60 = vpop.f32.mrb[20].mxu0  ;;  %1298 = vmatmul.mubr.msk.bf16.vlgmr.msra.gmra.mrb[8].mxu1 %vm669_vm1, %v626_v56  ;;  %1305 = vmatprep.subr.bf16.mxu1 %v581_v59  ;;  %v640_v56 = vld [vmem:[#allocation2 + $0x18] sm:$0xff] }
 0x118   : > { %v526_v61 = vpop.f32.mrb[21].mxu0  ;;  %1306 = vmatpush3.bf16.msra.mxu1 %v581_v59  ;;  %1301 = vmatprep.mubr.msk.bf16.mxu1 %vm669_vm1, %v627_v58  ;;  %v535_v3 = vadd.f32 %v1263_v60, %v1632_v55  ;;  %v638_v59 = vld [vmem:[#allocation2 + $0x8] sm:$0xff] }
 0x119   : > { %v1264_v0 = vpop.f32.mrb[22].mxu0  ;;  %1307 = vmatprep.subr.bf16.mxu1 %v582_v57  ;;  %v527_v6 = vadd.f32 %v1632_v55, %v526_v61 }
 0x11a   : > { %v538_v4 = vadd.f32 %v1264_v0, %v1632_v55  ;;  %v529_v5 = vpop.f32.mrb[23].mxu0 }
 0x11b   : > { %v530_v7 = vadd.f32 %v1632_v55, %v529_v5  ;;  %v643_v5 = vld [vmem:[#allocation2 + $0x30] sm:$0xff] }
 0x11c   : > { %v584_v9 = vpack.c.bf16 %v538_v4, %v535_v3  ;;  %1308 = vmatpush3.bf16.msra.mxu1 %v582_v57 }
 0x11d   : > { %v583_v11 = vpack.c.bf16 %v530_v7, %v527_v6  ;;  %v641_v6 = vld [vmem:[#allocation2 + $0x20] sm:$0xff] }
 0x11f   : > { %v1267_v12 = vpop.f32.mrb[24].mxu0  ;;  %1302 = vmatmul.mubr.msk.bf16.gmra.mrb[12].mxu1 %vm669_vm1, %v628_v8  ;;  %1309 = vmatprep.subr.bf16.mxu1 %v583_v11  ;;  %v644_v8 = vld [vmem:[#allocation2 + $0x38] sm:$0xff] }
 0x120   : > { %v542_v13 = vpop.f32.mrb[25].mxu0  ;;  %1310 = vmatpush3.bf16.msra.mxu1 %v583_v11  ;;  %1313 = vmatprep.mubr.msk.bf16.mxu1 %vm669_vm1, %v629_v10  ;;  %v551_v19 = vadd.f32 %v1267_v12, %v1632_v55  ;;  %v642_v11 = vld [vmem:[#allocation2 + $0x28] sm:$0xff] }
 0x121   : > { %v1268_v16 = vpop.f32.mrb[26].mxu0  ;;  %1311 = vmatprep.subr.bf16.mxu1 %v584_v9  ;;  %v543_v22 = vadd.f32 %v1632_v55, %v542_v13 }
 0x122   : > { %v554_v20 = vadd.f32 %v1268_v16, %v1632_v55  ;;  %v545_v21 = vpop.f32.mrb[27].mxu0 }
 0x123   : > { %v546_v23 = vadd.f32 %v1632_v55, %v545_v21  ;;  %v647_v21 = vld [vmem:[#allocation2 + $0x50] sm:$0xff] }
 0x124   : > { %v586_v25 = vpack.c.bf16 %v554_v20, %v551_v19  ;;  %1312 = vmatpush3.bf16.msra.mxu1 %v584_v9 }
 0x125   : > { %v585_v27 = vpack.c.bf16 %v546_v23, %v543_v22  ;;  %v645_v22 = vld [vmem:[#allocation2 + $0x40] sm:$0xff] }
 0x127   : > { %v1271_v28 = vpop.f32.mrb[28].mxu0  ;;  %1314 = vmatmul.mubr.msk.bf16.vlgmr.msra.gmra.mrb[16].mxu1 %vm669_vm1, %v630_v24  ;;  %1321 = vmatprep.subr.bf16.mxu1 %v585_v27  ;;  %v648_v24 = vld [vmem:[#allocation2 + $0x58] sm:$0xff] }
 0x128   : > { %v558_v29 = vpop.f32.mrb[29].mxu0  ;;  %1322 = vmatpush3.bf16.msra.mxu1 %v585_v27  ;;  %1317 = vmatprep.mubr.msk.bf16.mxu1 %vm669_vm1, %v631_v26  ;;  %v567_v35 = vadd.f32 %v1271_v28, %v1632_v55  ;;  %v646_v27 = vld [vmem:[#allocation2 + $0x48] sm:$0xff] }
 0x129   : > { %v1272_v32 = vpop.f32.mrb[30].mxu0  ;;  %1323 = vmatprep.subr.bf16.mxu1 %v586_v25  ;;  %v559_v38 = vadd.f32 %v1632_v55, %v558_v29 }
 0x12a   : > { %v570_v36 = vadd.f32 %v1272_v32, %v1632_v55  ;;  %v561_v37 = vpop.f32.mrb[31].mxu0 }
 0x12b   : > { %v562_v39 = vadd.f32 %v1632_v55, %v561_v37  ;;  %v618_v55 = vld [vmem:[%s1624_s12 + $0xe8] sm:$0xff]  ;;  %v651_v37 = vld [vmem:[#allocation2 + $0x70] sm:$0xff] }
 0x12c   : > { %v588_v41 = vpack.c.bf16 %v570_v36, %v567_v35  ;;  %1324 = vmatpush3.bf16.msra.mxu1 %v586_v25  ;;  %v635_v48 = vpack.c.bf16 %v618_v55, %v617_v46 }
 0x12d   : > { %v587_v43 = vpack.c.bf16 %v562_v39, %v559_v38  ;;  %v649_v38 = vld [vmem:[#allocation2 + $0x60] sm:$0xff] }
 0x12f   : > { %1318 = vmatmul.mubr.msk.bf16.gmra.mrb[20].mxu1 %vm669_vm1, %v632_v40  ;;  %1325 = vmatprep.subr.bf16.mxu1 %v587_v43  ;;  %v652_v40 = vld [vmem:[#allocation2 + $0x78] sm:$0xff] }
 0x130   : > { %1326 = vmatpush3.bf16.msra.mxu1 %v587_v43  ;;  %1329 = vmatprep.mubr.msk.bf16.mxu1 %vm669_vm1, %v633_v42  ;;  %v650_v43 = vld [vmem:[#allocation2 + $0x68] sm:$0xff] }
 0x131   : > { %1327 = vmatprep.subr.bf16.mxu1 %v588_v41 }
 0x134   : > { %1328 = vmatpush3.bf16.msra.mxu1 %v588_v41 }
 0x137   : > { %1330 = vmatmul.mubr.msk.bf16.vlgmr.msra.gmra.mrb[24].mxu1 %vm669_vm1, %v634_v47 }
 0x138   : > { %1333 = vmatprep.mubr.msk.bf16.mxu1 %vm669_vm1, %v635_v48 }
 0x13f   : > { %1334 = vmatmul.mubr.msk.bf16.gmra.mrb[28].mxu1 %vm669_vm1, %v636_v51 }
 0x1da   : > { %v1283_v54 = vpop.f32.mrb[0].mxu1 }
 0x1db   : > { %v725_v57 = vadd.f32 %v1283_v54, %v639_v52  ;;  %v716_v58 = vpop.f32.mrb[1].mxu1  ;;  %v655_v52 = vld [vmem:[#allocation2 + $0x90] sm:$0xff] }
 0x1dc   : > { %v717_v60 = vadd.f32 %v716_v58, %v637_v53  ;;  %v1284_v61 = vpop.f32.mrb[2].mxu1  ;;  %v653_v53 = vld [vmem:[#allocation2 + $0x80] sm:$0xff] }
 0x1dd   : > { %v980_v62 = vmax.f32 %v725_v57, 0.0  ;;  %v728_v63 = vadd.f32 %v1284_v61, %v640_v56  ;;  %v719_v0 = vpop.f32.mrb[3].mxu1  ;;  %v656_v56 = vld [vmem:[#allocation2 + $0x98] sm:$0xff] }
 0x1de   : > { %v978_v1 = vmax.f32 %v717_v60, 0.0  ;;  %v720_v2 = vadd.f32 %v719_v0, %v638_v59  ;;  %v654_v59 = vld [vmem:[#allocation2 + $0x88] sm:$0xff] }
 0x1df   : > { %1012 = vst [vmem:[%s1714_s23 + $0x10] sm:$0xff] %v980_v62  ;;  %v981_v3 = vmax.f32 %v728_v63, 0.0 }
 0x1e0   : > { %1010 = vst [vmem:[%s1714_s23] sm:$0xff] %v978_v1  ;;  %v979_v4 = vmax.f32 %v720_v2, 0.0 }
 0x1e1   : > { %1013 = vst [vmem:[%s1714_s23 + $0x18] sm:$0xff] %v981_v3 }
 0x1e2   : > { %1011 = vst [vmem:[%s1714_s23 + $0x8] sm:$0xff] %v979_v4  ;;  %v1287_v7 = vpop.f32.mrb[4].mxu1 }
 0x1e3   : > { %v741_v9 = vadd.f32 %v1287_v7, %v643_v5  ;;  %v732_v10 = vpop.f32.mrb[5].mxu1  ;;  %v659_v5 = vld [vmem:[#allocation2 + $0xb0] sm:$0xff] }
 0x1e4   : > { %v733_v12 = vadd.f32 %v732_v10, %v641_v6  ;;  %v1288_v13 = vpop.f32.mrb[6].mxu1  ;;  %v657_v6 = vld [vmem:[#allocation2 + $0xa0] sm:$0xff] }
 0x1e5   : > { %v984_v14 = vmax.f32 %v741_v9, 0.0  ;;  %v744_v15 = vadd.f32 %v1288_v13, %v644_v8  ;;  %v735_v16 = vpop.f32.mrb[7].mxu1  ;;  %v660_v8 = vld [vmem:[#allocation2 + $0xb8] sm:$0xff] }
 0x1e6   : > { %v982_v17 = vmax.f32 %v733_v12, 0.0  ;;  %v736_v18 = vadd.f32 %v735_v16, %v642_v11  ;;  %v658_v11 = vld [vmem:[#allocation2 + $0xa8] sm:$0xff] }
 0x1e7   : > { %1016 = vst [vmem:[%s1714_s23 + $0x30] sm:$0xff] %v984_v14  ;;  %v985_v19 = vmax.f32 %v744_v15, 0.0 }
 0x1e8   : > { %1014 = vst [vmem:[%s1714_s23 + $0x20] sm:$0xff] %v982_v17  ;;  %v983_v20 = vmax.f32 %v736_v18, 0.0 }
 0x1e9   : > { %1017 = vst [vmem:[%s1714_s23 + $0x38] sm:$0xff] %v985_v19 }
 0x1ea   : > { %1015 = vst [vmem:[%s1714_s23 + $0x28] sm:$0xff] %v983_v20  ;;  %v1299_v23 = vpop.f32.mrb[8].mxu1 }
 0x1eb   : > { %v802_v25 = vadd.f32 %v1299_v23, %v647_v21  ;;  %v793_v26 = vpop.f32.mrb[9].mxu1  ;;  %v663_v21 = vld [vmem:[#allocation2 + $0xd0] sm:$0xff] }
 0x1ec   : > { %v794_v28 = vadd.f32 %v793_v26, %v645_v22  ;;  %v1300_v29 = vpop.f32.mrb[10].mxu1  ;;  %v661_v22 = vld [vmem:[#allocation2 + $0xc0] sm:$0xff] }
 0x1ed   : > { %v988_v30 = vmax.f32 %v802_v25, 0.0  ;;  %v805_v31 = vadd.f32 %v1300_v29, %v648_v24  ;;  %v796_v32 = vpop.f32.mrb[11].mxu1  ;;  %v664_v24 = vld [vmem:[#allocation2 + $0xd8] sm:$0xff] }
 0x1ee   : > { %v986_v33 = vmax.f32 %v794_v28, 0.0  ;;  %v797_v34 = vadd.f32 %v796_v32, %v646_v27  ;;  %v662_v27 = vld [vmem:[#allocation2 + $0xc8] sm:$0xff] }
 0x1ef   : > { %1020 = vst [vmem:[%s1714_s23 + $0x50] sm:$0xff] %v988_v30  ;;  %v989_v35 = vmax.f32 %v805_v31, 0.0 }
 0x1f0   : > { %1018 = vst [vmem:[%s1714_s23 + $0x40] sm:$0xff] %v986_v33  ;;  %v987_v36 = vmax.f32 %v797_v34, 0.0 }
 0x1f1   : > { %1021 = vst [vmem:[%s1714_s23 + $0x58] sm:$0xff] %v989_v35 }
 0x1f2   : > { %1019 = vst [vmem:[%s1714_s23 + $0x48] sm:$0xff] %v987_v36  ;;  %v1303_v39 = vpop.f32.mrb[12].mxu1 }
 0x1f3   : > { %v818_v41 = vadd.f32 %v1303_v39, %v651_v37  ;;  %v809_v42 = vpop.f32.mrb[13].mxu1  ;;  %v667_v37 = vld [vmem:[#allocation2 + $0xf0] sm:$0xff] }
 0x1f4   : > { %v810_v44 = vadd.f32 %v809_v42, %v649_v38  ;;  %v1304_v45 = vpop.f32.mrb[14].mxu1  ;;  %v665_v38 = vld [vmem:[#allocation2 + $0xe0] sm:$0xff] }
 0x1f5   : > { %v992_v46 = vmax.f32 %v818_v41, 0.0  ;;  %v821_v55 = vadd.f32 %v1304_v45, %v652_v40  ;;  %v812_v47 = vpop.f32.mrb[15].mxu1  ;;  %v668_v40 = vld [vmem:[#allocation2 + $0xf8] sm:$0xff] }
 0x1f6   : > { %v990_v48 = vmax.f32 %v810_v44, 0.0  ;;  %v813_v49 = vadd.f32 %v812_v47, %v650_v43  ;;  %v666_v43 = vld [vmem:[#allocation2 + $0xe8] sm:$0xff] }
 0x1f7   : > { %1024 = vst [vmem:[%s1714_s23 + $0x70] sm:$0xff] %v992_v46  ;;  %v993_v50 = vmax.f32 %v821_v55, 0.0 }
 0x1f8   : > { %1022 = vst [vmem:[%s1714_s23 + $0x60] sm:$0xff] %v990_v48  ;;  %v991_v51 = vmax.f32 %v813_v49, 0.0 }
 0x1f9   : > { %1025 = vst [vmem:[%s1714_s23 + $0x78] sm:$0xff] %v993_v50 }
 0x1fa   : > { %1023 = vst [vmem:[%s1714_s23 + $0x68] sm:$0xff] %v991_v51  ;;  %v1315_v54 = vpop.f32.mrb[16].mxu1 }
 0x1fb   : > { %v879_v57 = vadd.f32 %v1315_v54, %v655_v52  ;;  %v870_v58 = vpop.f32.mrb[17].mxu1 }
 0x1fc   : > { %v871_v60 = vadd.f32 %v870_v58, %v653_v53  ;;  %v1316_v61 = vpop.f32.mrb[18].mxu1 }
 0x1fd   : > { %v996_v62 = vmax.f32 %v879_v57, 0.0  ;;  %v882_v63 = vadd.f32 %v1316_v61, %v656_v56  ;;  %v873_v0 = vpop.f32.mrb[19].mxu1 }
 0x1fe   : > { %v994_v1 = vmax.f32 %v871_v60, 0.0  ;;  %v874_v2 = vadd.f32 %v873_v0, %v654_v59 }
 0x1ff   : > { %1028 = vst [vmem:[%s1714_s23 + $0x90] sm:$0xff] %v996_v62  ;;  %v997_v3 = vmax.f32 %v882_v63, 0.0 }
 0x200   : > { %1026 = vst [vmem:[%s1714_s23 + $0x80] sm:$0xff] %v994_v1  ;;  %v995_v4 = vmax.f32 %v874_v2, 0.0 }
 0x201   : > { %1029 = vst [vmem:[%s1714_s23 + $0x98] sm:$0xff] %v997_v3 }
 0x202   : > { %1027 = vst [vmem:[%s1714_s23 + $0x88] sm:$0xff] %v995_v4  ;;  %v1319_v7 = vpop.f32.mrb[20].mxu1 }
 0x203   : > { %v895_v9 = vadd.f32 %v1319_v7, %v659_v5  ;;  %v886_v10 = vpop.f32.mrb[21].mxu1 }
 0x204   : > { %v887_v12 = vadd.f32 %v886_v10, %v657_v6  ;;  %v1320_v13 = vpop.f32.mrb[22].mxu1 }
 0x205   : > { %v1000_v14 = vmax.f32 %v895_v9, 0.0  ;;  %v898_v15 = vadd.f32 %v1320_v13, %v660_v8  ;;  %v889_v16 = vpop.f32.mrb[23].mxu1 }
 0x206   : > { %v998_v17 = vmax.f32 %v887_v12, 0.0  ;;  %v890_v18 = vadd.f32 %v889_v16, %v658_v11 }
 0x207   : > { %1032 = vst [vmem:[%s1714_s23 + $0xb0] sm:$0xff] %v1000_v14  ;;  %v1001_v19 = vmax.f32 %v898_v15, 0.0 }
 0x208   : > { %1030 = vst [vmem:[%s1714_s23 + $0xa0] sm:$0xff] %v998_v17  ;;  %v999_v20 = vmax.f32 %v890_v18, 0.0 }
 0x209   : > { %1033 = vst [vmem:[%s1714_s23 + $0xb8] sm:$0xff] %v1001_v19 }
 0x20a   : > { %1031 = vst [vmem:[%s1714_s23 + $0xa8] sm:$0xff] %v999_v20  ;;  %v1331_v23 = vpop.f32.mrb[24].mxu1 }
 0x20b   : > { %v956_v25 = vadd.f32 %v1331_v23, %v663_v21  ;;  %v947_v26 = vpop.f32.mrb[25].mxu1 }
 0x20c   : > { %v948_v28 = vadd.f32 %v947_v26, %v661_v22  ;;  %v1332_v29 = vpop.f32.mrb[26].mxu1 }
 0x20d   : > { %v1004_v30 = vmax.f32 %v956_v25, 0.0  ;;  %v959_v31 = vadd.f32 %v1332_v29, %v664_v24  ;;  %v950_v32 = vpop.f32.mrb[27].mxu1 }
 0x20e   : > { %v1002_v33 = vmax.f32 %v948_v28, 0.0  ;;  %v951_v34 = vadd.f32 %v950_v32, %v662_v27 }
 0x20f   : > { %1036 = vst [vmem:[%s1714_s23 + $0xd0] sm:$0xff] %v1004_v30  ;;  %v1005_v35 = vmax.f32 %v959_v31, 0.0 }
 0x210   : > { %1034 = vst [vmem:[%s1714_s23 + $0xc0] sm:$0xff] %v1002_v33  ;;  %v1003_v36 = vmax.f32 %v951_v34, 0.0 }
 0x211   : > { %1037 = vst [vmem:[%s1714_s23 + $0xd8] sm:$0xff] %v1005_v35 }
 0x212   : > { %1035 = vst [vmem:[%s1714_s23 + $0xc8] sm:$0xff] %v1003_v36  ;;  %v1335_v39 = vpop.f32.mrb[28].mxu1 }
 0x213   : > { %v972_v41 = vadd.f32 %v1335_v39, %v667_v37  ;;  %v963_v42 = vpop.f32.mrb[29].mxu1 }
 0x214   : > { %v964_v44 = vadd.f32 %v963_v42, %v665_v38  ;;  %v1336_v45 = vpop.f32.mrb[30].mxu1 }
 0x215   : > { %v1008_v46 = vmax.f32 %v972_v41, 0.0  ;;  %v975_v55 = vadd.f32 %v1336_v45, %v668_v40  ;;  %v966_v47 = vpop.f32.mrb[31].mxu1 }
 0x216   : > { %v1006_v48 = vmax.f32 %v964_v44, 0.0  ;;  %v967_v49 = vadd.f32 %v966_v47, %v666_v43 }
 0x217   : > { %1040 = vst [vmem:[%s1714_s23 + $0xf0] sm:$0xff] %v1008_v46  ;;  %v1009_v50 = vmax.f32 %v975_v55, 0.0 }
 0x218   : > { %1038 = vst [vmem:[%s1714_s23 + $0xe0] sm:$0xff] %v1006_v48  ;;  %v1007_v51 = vmax.f32 %v967_v49, 0.0 }
 0x219   : > { %1041 = vst [vmem:[%s1714_s23 + $0xf8] sm:$0xff] %v1009_v50 }
 0x21a   : > { %1039 = vst [vmem:[%s1714_s23 + $0xe8] sm:$0xff] %v1007_v51 }
 0x21b   : > { %1394 = shalt.err (!%p1391_p3)
}
 0x21c   : > { %s1395_s10 = scalar_lea.hbm %s1750_s5, 4096  ;;  %s1399_s13 = scalar_lea.hbm %s1804_s4, 8192 }
 0x21d   : > { %p1396_p4 = scmp.ne.s32.totalorder %s1750_s5, %s1395_s10  ;;  %p1400_p9 = scmp.lt.u32.totalorder %s1750_s5, %s1804_s4 }
 0x21e   : > { %p1401_p10 = scmp.lt.u32.totalorder %s1399_s13, %s1395_s10  ;;  %p1403_p12 = scmp.lt.u32.totalorder %s1395_s10, %s1750_s5 }
 0x21f   : > { %p1397_p7 = pnand %p1396_p4, %p1512_p5 }
 0x220   : > { %p1402_p11 = por %p1401_p10, %p1400_p9 }
 0x221   : > { %p1398_p8 = pneg %p1397_p7 }
 0x222   : > { %p1404_p13 = por %p1403_p12, %p1402_p11 }
 0x224   : > { %p1405_p0 = pnand %p1404_p13, %p1398_p8 }
 0x226   : > { %1408 = shalt.err (!%p1405_p0)
}
 0x227   : > { %s1447_s22 = smov 128   ;;  %s1448_s23 = smov 8  }
 0x228   : > { %1337 = dma.vmem_to_hbm [thread:$0]  (%p1512_p5), %s1752_s28, 4096, %s1750_s5, %s1759_s19, %s1447_s22, %s1447_s22, %s1448_s23  }
 0x229 PF: > { %p1343_p1 = scmp.ge.s32.totalorder %s1443_s18, 2  ;;  %s1072_s27 = sand.u32 1, %s1431_s15  }
 0x22a   : > { %s1073_s29 = scalar_lea.sflag [#allocation4], %s1072_s27 }
 0x22b   : > { %p1340_p2 = pnand %p1343_p1, %p1516_p6 }
 0x22d   : > { %1426 = dma.done.wait (!%p1340_p2), %s1073_s29, 4096  }
 0x22e   : > { %1428 = vsyncadd (!%p1340_p2), %s1073_s29, 4294963200  ;;  %p14_p3 = scmp.ge.s32.totalorder %s1499_s21, 4   ;;  %s1807_s15 = smov %s1435_s16 }
 0x22f   : > { %s1808_s16 = smov %s1439_s17  ;;  %s1809_s17 = smov %s1510_s24 }
 0x230   : > { %s1810_s18 = smov %s1499_s21  ;;  %16 = sbr.rel (!%p14_p3) target bundleno = 3 (0x3), region = 74 }
 0x237   :  { %1078 = vsyncpa [#allocation4], 1 }
 0x238   :  { %1080 = vsyncpa [#allocation4 + $0x1], 1 }

</bundles_post_ra>
